<compile_context>
chip_gen: v7x
topology: tpu7x:2x2x1
jax: 0.10.0
libtpu: 0.0.40
codegen_flags: <defaults>
</compile_context>

<pallas_src>
import functools

import jax
import jax.numpy as jnp
from jax.experimental import pallas as pl
from jax.experimental.pallas import tpu as pltpu

_EPS = 1e-5


def _tpu_vmem_capacity_bytes():
    try:
        cap = getattr(pltpu.get_tpu_info(), "vmem_capacity_bytes", None)
        if cap:
            return int(cap)
    except Exception:
        pass
    return 64 << 20  # conservative fallback (v7x-sized VMEM)


_VMEM_CAP = _tpu_vmem_capacity_bytes()
# Leave headroom below physical capacity: v5e/v6e (128 MiB) -> 112 MiB limit,
# v7x (64 MiB) -> 48 MiB limit.
_VMEM_LIMIT = int(max(32 << 20, min(_VMEM_CAP - (16 << 20), 112 << 20)))
# Budget for double-buffered blocks + in-kernel f32 temps.
_WORK_BUDGET = int(_VMEM_LIMIT * 0.6)


def _per_elem_bytes(dtype):
    isize = jnp.dtype(dtype).itemsize
    # double-buffered input + double-buffered output + f32/iota temps
    return 4 * isize + 12


# ---------------------------------------------------------------------------
# Fused channel-stripe path: grid over channel stripes, each stripe's full
# (B, c_blk, T) slab is VMEM resident.  1 HBM read + 1 HBM write total.
# ---------------------------------------------------------------------------
def _stripe_kernel(x_ref, o_ref):
    xf = x_ref[...]                                   # (B, c_blk, T)
    if xf.dtype != jnp.float32:
        xf = xf.astype(jnp.float32)
    m = jnp.max(jnp.abs(xf), axis=2, keepdims=True)   # lane reduce   (B, c_blk, 1)
    m = jnp.max(m, axis=0, keepdims=True)             # batch reduce  (1, c_blk, 1)
    inv = 1.0 / (m + _EPS)                            # exact, only c_blk divides
    o_ref[...] = (xf * inv).astype(o_ref.dtype)


def _channel_norm_stripes(x, c_block):
    B, C, T = x.shape
    num_stripes = pl.cdiv(C, c_block)
    return pl.pallas_call(
        _stripe_kernel,
        out_shape=jax.ShapeDtypeStruct((B, C, T), x.dtype),
        grid=(num_stripes,),
        in_specs=[pl.BlockSpec((B, c_block, T), lambda c: (0, c, 0))],
        out_specs=pl.BlockSpec((B, c_block, T), lambda c: (0, c, 0)),
        compiler_params=pltpu.CompilerParams(
            dimension_semantics=("parallel",),
            vmem_limit_bytes=_VMEM_LIMIT),
    )(x)


# ---------------------------------------------------------------------------
# Two-pass path for tensors whose minimal channel stripe does not fit VMEM.
# ---------------------------------------------------------------------------
def _partial_max_kernel(x_ref, pmax_ref, *, t_block, t_inner, nt, T):
    b = pl.program_id(1)
    t = pl.program_id(2)

    @pl.when(jnp.logical_and(b == 0, t == 0))
    def _init():
        pmax_ref[...] = jnp.zeros_like(pmax_ref)      # |x| >= 0 -> 0 is neutral

    xf = x_ref[...]                                   # (C, t_block), B squeezed
    if xf.dtype != jnp.float32:
        xf = xf.astype(jnp.float32)
    ax = jnp.abs(xf)
    if T % t_block != 0:
        # Mask the ragged T tail in-kernel instead of padding in HBM.
        p = pl.program_id(0)
        tile_idx = jnp.minimum(p * t_inner + t, nt - 1)
        col = tile_idx * t_block + jax.lax.broadcasted_iota(jnp.int32, ax.shape, 1)
        ax = jnp.where(col < T, ax, 0.0)
    tile_max = jnp.max(ax, axis=1, keepdims=True)     # (C, 1) lane reduce
    pmax_ref[...] = jnp.maximum(pmax_ref[...], tile_max)   # broadcast to 128 lanes


def _scale_kernel(pmax_ref, x_ref, o_ref):
    # Combine the per-core partial maxima and take the exact reciprocal
    # (only C * num_partials values), then a single VPU multiply per tile.
    inv = 1.0 / (jnp.max(pmax_ref[...], axis=1, keepdims=True) + _EPS)   # (C, 1)
    xf = x_ref[...]                                                      # (C, t_blk)
    if xf.dtype != jnp.float32:
        xf = xf.astype(jnp.float32)
    o_ref[...] = (xf * inv).astype(o_ref.dtype)


def _channel_norm_two_pass(x, t_block):
    B, C, T = x.shape
    nt = pl.cdiv(T, t_block)
    # 2-way "parallel" split of the T tiles so pass 1 can use both v7x
    # TensorCores (single-TC v5e/v6e just runs the two slices sequentially).
    P = 2 if nt >= 2 else 1
    t_inner = pl.cdiv(nt, P)

    kernel1 = functools.partial(_partial_max_kernel,
                                t_block=t_block, t_inner=t_inner, nt=nt, T=T)

    if P * t_inner == nt:
        def x_map1(p, b, t):
            return (b, 0, p * t_inner + t)
    else:
        def x_map1(p, b, t):
            # Clamp duplicated tail tiles (max is idempotent -> safe to redo).
            return (b, 0, jnp.minimum(p * t_inner + t, nt - 1))

    pmax = pl.pallas_call(
        kernel1,
        out_shape=jax.ShapeDtypeStruct((C, P * 128), jnp.float32),
        grid=(P, B, t_inner),
        in_specs=[pl.BlockSpec((pl.Squeezed(), C, t_block), x_map1)],
        out_specs=pl.BlockSpec((C, 128), lambda p, b, t: (0, p)),
        compiler_params=pltpu.CompilerParams(
            dimension_semantics=("parallel", "arbitrary", "arbitrary"),
            vmem_limit_bytes=_VMEM_LIMIT),
    )(x)

    return pl.pallas_call(
        _scale_kernel,
        out_shape=jax.ShapeDtypeStruct((B, C, T), x.dtype),
        grid=(B, nt),
        in_specs=[pl.BlockSpec((C, P * 128), lambda b, t: (0, 0)),
                  pl.BlockSpec((pl.Squeezed(), C, t_block), lambda b, t: (b, 0, t))],
        out_specs=pl.BlockSpec((pl.Squeezed(), C, t_block), lambda b, t: (b, 0, t)),
        compiler_params=pltpu.CompilerParams(
            dimension_semantics=("parallel", "parallel"),
            vmem_limit_bytes=_VMEM_LIMIT),
    )(pmax, x)


# ---------------------------------------------------------------------------
# Dispatch helpers + public wrapper.
# ---------------------------------------------------------------------------
def _stripe_channels(B, C, T, per_elem):
    per_channel = max(1, B * T * per_elem)
    fit = _WORK_BUDGET // per_channel
    if fit >= C and C < 16:
        return C                    # whole tensor in a single resident stripe
    # Prefer >= 2 stripes (megacore-shardable) in multiples of 8 channels.
    c_block = int(min(fit, pl.cdiv(C, 2)) // 8) * 8
    return c_block if c_block >= 8 else 0


def _two_pass_t_block(C, T, per_elem):
    per_col = max(1, C * per_elem)
    fit = _WORK_BUDGET // per_col
    if T <= fit or T <= 128:
        return T
    return max(128, int(fit // 128) * 128)


@functools.partial(jax.jit, static_argnames=("force_two_pass", "t_block"))
def channel_norm(x, *, force_two_pass=False, t_block=None):
    """ChannelNorm forward.  x: (B, C, T) float array in its native layout."""
    B, C, T = x.shape
    per_elem = _per_elem_bytes(x.dtype)

    if not force_two_pass:
        c_block = _stripe_channels(B, C, T, per_elem)
        if c_block > 0:
            return _channel_norm_stripes(x, c_block)

    if t_block is None:
        t_block = _two_pass_t_block(C, T, per_elem)
    else:
        t_block = T if t_block >= T else max(128, (t_block // 128) * 128)
    return _channel_norm_two_pass(x, t_block)


def _channel_norm_ref(x):
    # Pure-JAX reference mirroring the PyTorch code.
    divider = jnp.max(jnp.abs(x), axis=(0, 2)) + _EPS   # (C,)
    return x / divider[None, :, None]


if __name__ == "__main__":
    key = jax.random.PRNGKey(0)

    # Small TCN-style input (batch, channels, seq).
    B, C, T = 2, 4, 16
    x = jax.random.normal(key, (B, C, T), dtype=jnp.float32)
    ref = _channel_norm_ref(x)

    out = channel_norm(x)                                 # fused stripe path
    jax.block_until_ready(out)
    assert out.shape == (B, C, T)
    assert jnp.allclose(out, ref, atol=1e-6, rtol=1e-6)

    out2 = channel_norm(x, force_two_pass=True)           # two-pass, single tile
    jax.block_until_ready(out2)
    assert jnp.allclose(out2, ref, atol=1e-6, rtol=1e-6)

    # Second small shape exercises the multi-stripe grid and the two-pass path
    # with multiple lane tiles, the 2-way parallel split and the ragged-tail mask.
    B2, C2, T2 = 2, 16, 200
    x2 = jax.random.normal(jax.random.PRNGKey(0), (B2, C2, T2), dtype=jnp.float32)
    ref2 = _channel_norm_ref(x2)

    out3 = channel_norm(x2)                               # 2 channel stripes
    jax.block_until_ready(out3)
    assert jnp.allclose(out3, ref2, atol=1e-6, rtol=1e-6)

    out4 = channel_norm(x2, force_two_pass=True, t_block=128)   # nt=2, P=2, ragged
    jax.block_until_ready(out4)
    assert jnp.allclose(out4, ref2, atol=1e-6, rtol=1e-6)

    print("KERNEL_OK")
</pallas_src>

<mosaic_0001>
module attributes {stable_mosaic.version = 11 : i64} {
  func.func @_stripe_kernel(%arg0: i32, %arg1: memref<2x4x16xf32, #tpu.memory_space<vmem>>, %arg2: memref<2x4x16xf32, #tpu.memory_space<vmem>>) attributes {dimension_semantics = [#tpu.dimension_semantics<parallel>], iteration_bounds = array<i64: 1>, scalar_prefetch = 0 : i64, scratch_operands = 0 : i64, tpu.core_type = #tpu.core_type<tc>, window_params = [{transform_indices = @transform_0, window_bounds = array<i64: 2, 4, 16>}, {transform_indices = @transform_1, window_bounds = array<i64: 2, 4, 16>}]} {
    %c0 = arith.constant 0 : index
    %c0_0 = arith.constant 0 : index
    %c0_1 = arith.constant 0 : index
    %0 = vector.load %arg1[%c0, %c0_0, %c0_1] : memref<2x4x16xf32, #tpu.memory_space<vmem>>, vector<2x4x16xf32>
    %1 = math.absf %0 : vector<2x4x16xf32>
    %cst = arith.constant dense<0xFF800000> : vector<2x4xf32>
    %2 = vector.multi_reduction <maximumf>, %1, %cst [2] : vector<2x4x16xf32> to vector<2x4xf32>
    %3 = vector.shape_cast %2 : vector<2x4xf32> to vector<2x4x1xf32>
    %cst_2 = arith.constant dense<0xFF800000> : vector<4x1xf32>
    %4 = vector.multi_reduction <maximumf>, %3, %cst_2 [0] : vector<2x4x1xf32> to vector<4x1xf32>
    %5 = vector.shape_cast %4 : vector<4x1xf32> to vector<1x4x1xf32>
    %cst_3 = arith.constant 9.99999974E-6 : f32
    %6 = vector.broadcast %cst_3 : f32 to vector<1x4x1xf32>
    %7 = arith.addf %5, %6 : vector<1x4x1xf32>
    %cst_4 = arith.constant 1.000000e+00 : f32
    %8 = vector.broadcast %cst_4 : f32 to vector<1x4x1xf32>
    %9 = arith.divf %8, %7 : vector<1x4x1xf32>
    %10 = vector.broadcast %9 : vector<1x4x1xf32> to vector<2x4x16xf32>
    %11 = arith.mulf %0, %10 : vector<2x4x16xf32>
    %c0_5 = arith.constant 0 : index
    %c0_6 = arith.constant 0 : index
    %c0_7 = arith.constant 0 : index
    %12 = vector.load %arg2[%c0_5, %c0_6, %c0_7] : memref<2x4x16xf32, #tpu.memory_space<vmem>>, vector<2x4x16xf32>
    tpu.vector_store %arg2[%c0_5, %c0_6, %c0_7], %11 {strides = array<i32>} : memref<2x4x16xf32, #tpu.memory_space<vmem>>, vector<2x4x16xf32>,
    return
  }
  func.func @transform_0(%arg0: i32) -> (i32, i32, i32) {
    %c0_i32 = arith.constant 0 : i32
    %c0_i32_0 = arith.constant 0 : i32
    %c0_i32_1 = arith.constant 0 : i32
    return %c0_i32, %arg0, %c0_i32_0 : i32, i32, i32
  }
  func.func @transform_1(%arg0: i32) -> (i32, i32, i32) {
    %c0_i32 = arith.constant 0 : i32
    %c0_i32_0 = arith.constant 0 : i32
    %c0_i32_1 = arith.constant 0 : i32
    return %c0_i32, %arg0, %c0_i32_0 : i32, i32, i32
  }
}

</mosaic_0001>

<bundles_post_ra>
// kernel: channel_norm.1
= control target key start
LH: loop header
LB: loop body
LE: loop exit
PB: predicated region body
PF: predicated region fallthrough
CT: control target
= control target key end

     0   :  { %6 = vsyncpa [#allocation3], 0  ;;  %s164_s0 = inlined_call_operand.hbm [shape: f32[2,4,16], index: 0, kind: input, shape index: {}]   ;;  %s165_s1 = inlined_call_operand.hbm [shape: f32[2,4,16], index: 1, kind: output, shape index: {}]  }
   0x1   :  { %7 = vsyncpa [#allocation4], 0  ;;  %s116_s6 = smov [#allocation2]   ;;  %s68_s10 = scalar_lea.hbm %s164_s0, 128 }
   0x2   :  { %s13_s7 = sshll.u32 %s116_s6, 4  ;;  %p69_p0 = scmp.ne.s32.totalorder %s164_s0, %s68_s10  ;;  %s14_s7 = int_to_ptr.vmem [resolvable:$true] %s13_s7 }
   0x3   :  { %p72_p1 = scmp.lt.u32.totalorder %s68_s10, %s164_s0 }
   0x5   :  { %p74_p2 = pnand %p72_p1, %p69_p0 }
   0x7   :  { %77 = shalt.err (!%p74_p2)
}
   0x8   :  { %s78_s15 = scalar_lea.vmem %s14_s7, 128  ;;  %p83_p4 = scmp.lt.s32.totalorder %s14_s7, %s14_s7 }
   0x9   :  { %p79_p3 = scmp.ne.s32.totalorder %s14_s7, %s78_s15  ;;  %p84_p5 = scmp.lt.s32.totalorder %s78_s15, %s78_s15 }
   0xb   :  { %p85_p6 = por %p84_p5, %p83_p4 }
   0xd   :  { %p86_p7 = pnand %p85_p6, %p79_p3 }
   0xf   :  { %89 = shalt.err (!%p86_p7)
}
  0x10   :  { %s117_s16 = smov 64   ;;  %s118_s17 = smov 4  }
  0x11   :  { %19 = dma.hbm_to_vmem [thread:$0]  %s164_s0, 128, %s14_s7, [#allocation3], %s117_s16, %s117_s16, %s118_s17  }
  0x12   :  { %112 = dma.done.wait [#allocation3], 128  }
  0x13   :  { %113 = vsyncadd [#allocation3], 4294967168  ;;  %v23_v0 = vld [vmem:[#allocation2] sm:$0xf]  ;;  %vm27_vm0 = vcmask 125952   ;;  %vm34_vm1 = vcmask 1043456  }
  0x14   :  { %v24_v1 = vld [vmem:[#allocation2 + $0x4] sm:$0xf]  ;;  %v25_v2 = vand.u32 2147483647, %v23_v0  ;;  %s119_s0 = smov [#allocation5]  }
  0x15   :  { %v26_v3 = vand.u32 2147483647, %v24_v1  ;;  %s50_s20 = sshll.u32 %s119_s0, 4  ;;  %s51_s20 = int_to_ptr.vmem [resolvable:$true] %s50_s20 }
  0x16   :  { %v28_v4 = vsel %vm27_vm0, %v25_v2, -inf  ;;  %s90_s21 = scalar_lea.vmem %s51_s20, 128  ;;  %p95_p9 = scmp.lt.s32.totalorder %s51_s20, %s51_s20 }
  0x17   :  { %29 = vmax.xlane.f32.xlu0 %v28_v4  ;;  %v31_v5 = vsel %vm27_vm0, %v26_v3, -inf  ;;  %p91_p8 = scmp.ne.s32.totalorder %s51_s20, %s90_s21  ;;  %p96_p10 = scmp.lt.s32.totalorder %s90_s21, %s90_s21 }
  0x19   :  { %p97_p11 = por %p96_p10, %p95_p9 }
  0x1b   :  { %32 = vmax.xlane.f32.xlu0 %v31_v5  ;;  %p98_p12 = pnand %p97_p11, %p91_p8 }
  0xa4   :  { %v30_v6 = vpop.xlane.xlu0 %29 }
  0xa5   :  { %v35_v8 = vsel %vm34_vm1, %v30_v6, -inf }
  0xa8   :  { %v33_v7 = vpop.xlane.xlu0 %32 }
  0xa9   :  { %v36_v9 = vsel %vm34_vm1, %v33_v7, -inf }
  0xaa   :  { %v37_v10 = vmax.f32 %v35_v8, %v36_v9 }
  0xac   :  { %v38_v11 = vadd.f32 1e-05, %v37_v10 }
  0xae   :  { %66 = vrcp.f32 %v38_v11 }
  0xb8   :  { %v67_v12 = vpop.eup %66 }
  0xb9   :  { %v41_v13 = vmul.f32 %v67_v12, %v23_v0  ;;  %v42_v14 = vmul.f32 %v67_v12, %v24_v1 }
  0xbb   :  { %43 = vst.msk [vmem:[#allocation5] sm:$0xf] %vm27_vm0, %v41_v13  ;;  %44 = vst.msk [vmem:[#allocation5 + $0x4] sm:$0xf] %vm27_vm0, %v42_v14 }
  0xbc   :  { %101 = shalt.err (!%p98_p12)
}
  0xbd   :  { %s102_s24 = scalar_lea.hbm %s165_s1, 128 }
  0xbe   :  { %p103_p13 = scmp.ne.s32.totalorder %s165_s1, %s102_s24  ;;  %p106_p0 = scmp.lt.u32.totalorder %s102_s24, %s165_s1 }
  0xc0   :  { %p108_p1 = pnand %p106_p0, %p103_p13 }
  0xc2   :  { %111 = shalt.err (!%p108_p1)
}
  0xc3   :  { %56 = dma.vmem_to_hbm [thread:$0]  %s51_s20, 128, %s165_s1, [#allocation4], %s117_s16, %s117_s16, %s118_s17  }
  0xc4   :  { %114 = dma.done.wait [#allocation4], 128  }
  0xc5   :  { %115 = vsyncadd [#allocation4], 4294967168 }
  0xc6   :  { %60 = vsyncpa [#allocation3], 1 }
  0xc7   :  { %61 = vsyncpa [#allocation4], 1 }

</bundles_post_ra>
